<compile_context>
chip_gen: v5e
topology: v5e:2x2
jax: 0.10.0
libtpu: 0.0.40
codegen_flags: <defaults>
</compile_context>

<pallas_src>
import functools

import jax
import jax.numpy as jnp
from jax import lax
from jax.experimental import pallas as pl
from jax.experimental.pallas import tpu as pltpu


def _round_up(x, m):
    return (x + m - 1) // m * m


def _plan_tiles(L, W, Cout):
    """Static lane / Cout tiling plan (everything resolved at trace time)."""
    pad = _round_up(W + 1, 128)            # aligned halo: one image row + 1 pixel, lane-aligned
    tco = Cout if Cout <= 128 else 128     # Cout tile (MXU M dimension)
    # Keep the f32 accumulator (tco x tl) around <=128 KiB so it can stay in vregs.
    tl = (32768 // tco) // 128 * 128
    tl = max(128, min(2048, tl))
    tl = max(tl, pad)                      # halo slices must stay inside scratch / image
    tl = max(tl, _round_up(-(-L // 32), 128))   # cap the static unroll at ~32 lane tiles
    if L <= tl:
        sizes = (L,)
    else:
        t = L // tl
        sizes = (tl,) * (t - 1) + (L - (t - 1) * tl,)   # last tile absorbs the remainder
    return pad, tco, sizes


def _sepconv_kernel(x_ref, w_ref, b_ref, o_ref, hp_ref, *,
                    H, W, C, Cout, PADH, TCO, sizes):
    # x_ref : (1, C, L)      one image, spatial dims flattened onto the lane axis (L = H*W)
    # w_ref : (9, Cout, C)   fused per-tap weights  dw[tap, c] * pw[co, c]
    # b_ref : (Cout, 1)      pointwise bias (f32)
    # o_ref : (1, Cout, L)
    # hp_ref: (C, PADH + sizes[-1] + PADH) scratch, used only for the two boundary tiles
    L = H * W
    T = len(sizes)
    cdtype = x_ref.dtype
    zero = jnp.zeros((), cdtype)

    def compute_tile(l0, tl, read_tap):
        # The flattened +-1 lane shifts can only wrap across rows along W, so the dj != 1
        # taps need a per-column mask; the row halo is handled by zeros / tile bounds.
        col = (l0 + lax.broadcasted_iota(jnp.int32, (1, tl), 1)) % W
        not_first_col = col != 0          # valid output columns for taps with dj == -1
        not_last_col = col != (W - 1)     # valid output columns for taps with dj == +1
        for c0 in range(0, Cout, TCO):
            tco = min(TCO, Cout - c0)
            acc = jnp.zeros((tco, tl), jnp.float32)       # small, vreg-resident accumulator
            for di in range(3):
                for dj in range(3):
                    s = (di - 1) * W + (dj - 1)
                    xt = read_tap(s)                      # (C, tl) shifted tap input
                    if dj == 0:
                        xt = jnp.where(not_first_col, xt, zero)
                    elif dj == 2:
                        xt = jnp.where(not_last_col, xt, zero)
                    acc = acc + jnp.dot(w_ref[di * 3 + dj, c0:c0 + tco, :], xt,
                                        preferred_element_type=jnp.float32)
            acc = acc + b_ref[c0:c0 + tco, :]
            o_ref[0, c0:c0 + tco, l0:l0 + tl] = acc.astype(o_ref.dtype)

    l0 = 0
    for t in range(T):
        tl = sizes[t]
        first, last = t == 0, t == T - 1
        if first or last:
            # Stage tile + halo into the small scratch.  Only the out-of-image halo strips
            # are zero-filled; the in-image halo is real neighbouring data.
            if first:
                hp_ref[:, :PADH] = jnp.zeros((C, PADH), cdtype)
            else:
                hp_ref[:, :PADH] = x_ref[0, :, l0 - PADH:l0]
            hp_ref[:, PADH:PADH + tl] = x_ref[0, :, l0:l0 + tl]
            if last:
                hp_ref[:, PADH + tl:PADH + tl + PADH] = jnp.zeros((C, PADH), cdtype)
            else:
                hp_ref[:, PADH + tl:PADH + tl + PADH] = x_ref[0, :, l0 + tl:l0 + tl + PADH]
            read_tap = lambda s, _tl=tl: hp_ref[:, PADH + s:PADH + s + _tl]
        else:
            # Interior tiles: every shifted read is in-bounds -> slice x directly
            # (no copy, no zero-fill, no extra masks beyond the column masks).
            read_tap = lambda s, _l0=l0, _tl=tl: x_ref[0, :, _l0 + s:_l0 + s + _tl]
        compute_tile(l0, tl, read_tap)
        l0 += tl


def _vmem_limit_bytes():
    # ~3/4 of per-TensorCore VMEM: ~48 MiB on v7x (64 MiB/TC), ~96 MiB on v5e/v6e (128 MiB).
    try:
        cap = int(pltpu.get_tpu_info().vmem_capacity_bytes)
    except Exception:
        cap = 128 * 1024 * 1024
    return min(cap * 3 // 4, 100 * 1024 * 1024)


def separable_conv_block(x_nchw, dw_weight, pw_weight, pw_bias, *, compute_dtype=None):
    """Forward pass of SeparableConvBlock (norm='', activation=False).

    x_nchw:    (N, C, H, W)
    dw_weight: (C, 1, 3, 3)     PyTorch depthwise conv weight
    pw_weight: (Cout, C, 1, 1)  PyTorch pointwise conv weight
    pw_bias:   (Cout,)          pointwise bias
    compute_dtype: dtype for the MXU matmuls (e.g. jnp.bfloat16); accumulation stays f32.
    returns    (N, Cout, H, W) in x's dtype
    """
    N, C, H, W = x_nchw.shape
    Cout = pw_weight.shape[0]
    L = H * W
    out_dtype = x_nchw.dtype
    if compute_dtype is None:
        compute_dtype = x_nchw.dtype

    # Fold the depthwise taps into the pointwise weights:
    #   fused[tap, co, c] = dw[tap, c] * pw[co, c]
    dw = jnp.transpose(dw_weight[:, 0, :, :], (1, 2, 0)).reshape(9, 1, C)
    pw = pw_weight[:, :, 0, 0][None]                                      # (1, Cout, C)
    fused = (dw.astype(jnp.float32) * pw.astype(jnp.float32)).astype(compute_dtype)
    bias = pw_bias.reshape(Cout, 1).astype(jnp.float32)

    x_flat = x_nchw.reshape(N, C, L).astype(compute_dtype)   # pixels land on the lane axis

    PADH, TCO, sizes = _plan_tiles(L, W, Cout)

    kernel = functools.partial(
        _sepconv_kernel, H=H, W=W, C=C, Cout=Cout, PADH=PADH, TCO=TCO, sizes=sizes)

    # TODO(synk): add an H-tile "parallel" grid axis (overlapping halo blocks) so both v7x
    # TensorCores are fed when N is small/odd and per-step VMEM stays bounded for very
    # large feature maps.
    # TODO(synk): for small C, build a per-tile (9*C, TL) im2col strip and do one K=9C
    # matmul to raise MXU occupancy instead of 9 shallow-K matmuls.
    out_flat = pl.pallas_call(
        kernel,
        out_shape=jax.ShapeDtypeStruct((N, Cout, L), out_dtype),
        grid_spec=pltpu.PrefetchScalarGridSpec(
            num_scalar_prefetch=0,
            grid=(N,),
            in_specs=[
                pl.BlockSpec((1, C, L), lambda n: (n, 0, 0)),
                pl.BlockSpec((9, Cout, C), lambda n: (0, 0, 0)),
                pl.BlockSpec((Cout, 1), lambda n: (0, 0)),
            ],
            out_specs=pl.BlockSpec((1, Cout, L), lambda n: (n, 0, 0)),
            scratch_shapes=[
                pltpu.VMEM((C, PADH + sizes[-1] + PADH), compute_dtype)],
        ),
        compiler_params=pltpu.CompilerParams(
            dimension_semantics=("parallel",),
            vmem_limit_bytes=_vmem_limit_bytes()),
    )(x_flat, fused, bias)

    return out_flat.reshape(N, Cout, H, W)


def _reference(x_nchw, dw_weight, pw_weight, pw_bias):
    C = x_nchw.shape[1]
    y = jax.lax.conv_general_dilated(
        x_nchw, dw_weight, window_strides=(1, 1), padding="SAME",
        feature_group_count=C, dimension_numbers=("NCHW", "OIHW", "NCHW"))
    y = jax.lax.conv_general_dilated(
        y, pw_weight, window_strides=(1, 1), padding="VALID",
        dimension_numbers=("NCHW", "OIHW", "NCHW"))
    return y + pw_bias.reshape(1, -1, 1, 1)


if __name__ == "__main__":
    key = jax.random.PRNGKey(0)

    # --- small shape (single lane tile path), f32 compute ---
    N, C, H, W = 2, 4, 16, 16
    Cout = C  # out_channels=None -> in_channels
    k1, k2, k3, k4 = jax.random.split(key, 4)
    x = jax.random.normal(k1, (N, C, H, W), dtype=jnp.float32)
    dw_w = jax.random.normal(k2, (C, 1, 3, 3), dtype=jnp.float32) * 0.1
    pw_w = jax.random.normal(k3, (Cout, C, 1, 1), dtype=jnp.float32) * 0.1
    pw_b = jax.random.normal(k4, (Cout,), dtype=jnp.float32) * 0.1

    out = jax.block_until_ready(separable_conv_block(x, dw_w, pw_w, pw_b))
    ref = jax.block_until_ready(_reference(x, dw_w, pw_w, pw_b))
    assert out.shape == (N, Cout, H, W)
    assert jnp.allclose(out, ref, atol=1e-4, rtol=1e-4), "f32 mismatch vs lax.conv reference"

    # --- bf16 compute path (MXU-native), loose tolerance ---
    out_bf16 = jax.block_until_ready(
        separable_conv_block(x, dw_w, pw_w, pw_b, compute_dtype=jnp.bfloat16))
    assert jnp.allclose(out_bf16, ref, atol=3e-2, rtol=3e-2), "bf16 mismatch vs reference"

    # --- larger shape: multiple lane tiles (boundary + interior) and two Cout tiles ---
    N2, C2, H2, W2 = 1, 8, 12, 72
    Cout2 = 160
    j1, j2, j3, j4 = jax.random.split(jax.random.PRNGKey(1), 4)
    x2 = jax.random.normal(j1, (N2, C2, H2, W2), dtype=jnp.float32)
    dw2 = jax.random.normal(j2, (C2, 1, 3, 3), dtype=jnp.float32) * 0.1
    pw2 = jax.random.normal(j3, (Cout2, C2, 1, 1), dtype=jnp.float32) * 0.1
    pb2 = jax.random.normal(j4, (Cout2,), dtype=jnp.float32) * 0.1

    out2 = jax.block_until_ready(separable_conv_block(x2, dw2, pw2, pb2))
    ref2 = jax.block_until_ready(_reference(x2, dw2, pw2, pb2))
    assert out2.shape == (N2, Cout2, H2, W2)
    assert jnp.allclose(out2, ref2, atol=1e-4, rtol=1e-4), "multi-tile mismatch vs reference"

    print("KERNEL_OK")
</pallas_src>

<mosaic_0001>
module attributes {stable_mosaic.version = 11 : i64} {
  func.func @_sepconv_kernel(%arg0: i32, %arg1: memref<1x4x256xf32, #tpu.memory_space<vmem>>, %arg2: memref<9x4x4xf32, #tpu.memory_space<vmem>>, %arg3: memref<4x1xf32, #tpu.memory_space<vmem>>, %arg4: memref<1x4x256xf32, #tpu.memory_space<vmem>>, %arg5: memref<4x512xf32, #tpu.memory_space<vmem>>) attributes {dimension_semantics = [#tpu.dimension_semantics<parallel>], iteration_bounds = array<i64: 2>, scalar_prefetch = 0 : i64, scratch_operands = 1 : i64, tpu.core_type = #tpu.core_type<tc>, window_params = [{transform_indices = @transform_0, window_bounds = array<i64: 1, 4, 256>}, {pipeline_mode = #tpu.pipeline_mode<synchronous>, transform_indices = @transform_1, window_bounds = array<i64: 9, 4, 4>}, {pipeline_mode = #tpu.pipeline_mode<synchronous>, transform_indices = @transform_2, window_bounds = array<i64: 4, 1>}, {transform_indices = @transform_3, window_bounds = array<i64: 1, 4, 256>}]} {
    %cst = arith.constant 0.000000e+00 : f32
    %0 = vector.broadcast %cst : f32 to vector<4x128xf32>
    %c0 = arith.constant 0 : index
    %c0_0 = arith.constant 0 : index
    %1 = vector.load %arg5[%c0, %c0_0] : memref<4x512xf32, #tpu.memory_space<vmem>>, vector<4x128xf32>
    tpu.vector_store %arg5[%c0, %c0_0], %0 {strides = array<i32>} : memref<4x512xf32, #tpu.memory_space<vmem>>, vector<4x128xf32>,
    %c0_1 = arith.constant 0 : index
    %c0_2 = arith.constant 0 : index
    %c0_3 = arith.constant 0 : index
    %2 = vector.load %arg1[%c0_1, %c0_2, %c0_3] : memref<1x4x256xf32, #tpu.memory_space<vmem>>, vector<1x4x256xf32>
    %3 = vector.shape_cast %2 : vector<1x4x256xf32> to vector<4x256xf32>
    %c0_4 = arith.constant 0 : index
    %c128 = arith.constant 128 : index
    %4 = vector.load %arg5[%c0_4, %c128] : memref<4x512xf32, #tpu.memory_space<vmem>>, vector<4x256xf32>
    tpu.vector_store %arg5[%c0_4, %c128], %3 {strides = array<i32>} : memref<4x512xf32, #tpu.memory_space<vmem>>, vector<4x256xf32>,
    %cst_5 = arith.constant 0.000000e+00 : f32
    %5 = vector.broadcast %cst_5 : f32 to vector<4x128xf32>
    %c0_6 = arith.constant 0 : index
    %c384 = arith.constant 384 : index
    %6 = vector.load %arg5[%c0_6, %c384] : memref<4x512xf32, #tpu.memory_space<vmem>>, vector<4x128xf32>
    tpu.vector_store %arg5[%c0_6, %c384], %5 {strides = array<i32>} : memref<4x512xf32, #tpu.memory_space<vmem>>, vector<4x128xf32>,
    %7 = tpu.iota {dimensions = array<i32: 1>} : vector<1x256xi32>
    %c0_i32 = arith.constant 0 : i32
    %8 = vector.broadcast %c0_i32 : i32 to vector<1x256xi32>
    %9 = arith.addi %8, %7 : vector<1x256xi32>
    %c16_i32 = arith.constant 16 : i32
    %c0_i32_7 = arith.constant 0 : i32
    %10 = arith.cmpi eq, %c16_i32, %c0_i32_7 : i32
    %c1_i32 = arith.constant 1 : i32
    %11 = arith.select %10, %c1_i32, %c16_i32 : i32
    %12 = vector.broadcast %11 : i32 to vector<1x256xi32>
    %13 = arith.remsi %9, %12 : vector<1x256xi32>
    %c0_i32_8 = arith.constant 0 : i32
    %14 = vector.broadcast %c0_i32_8 : i32 to vector<1x256xi32>
    %15 = arith.cmpi ne, %13, %14 : vector<1x256xi32>
    %c0_i32_9 = arith.constant 0 : i32
    %16 = vector.broadcast %c0_i32_9 : i32 to vector<1x256xi32>
    %17 = arith.cmpi slt, %13, %16 : vector<1x256xi32>
    %c0_i32_10 = arith.constant 0 : i32
    %18 = arith.cmpi slt, %11, %c0_i32_10 : i32
    %19 = vector.broadcast %18 : i1 to vector<1x256xi1>
    %20 = vector.broadcast %19 : vector<1x256xi1> to vector<1x256xi1>
    %21 = arith.xori %17, %20 : vector<1x256xi1>
    %22 = arith.andi %21, %15 : vector<1x256xi1>
    %23 = vector.broadcast %11 : i32 to vector<1x256xi32>
    %24 = arith.addi %13, %23 : vector<1x256xi32>
    %25 = arith.select %22, %24, %13 : vector<1x256xi1>, vector<1x256xi32>
    %c0_i32_11 = arith.constant 0 : i32
    %26 = vector.broadcast %c0_i32_11 : i32 to vector<1x256xi32>
    %27 = arith.cmpi ne, %25, %26 : vector<1x256xi32>
    %c15_i32 = arith.constant 15 : i32
    %28 = vector.broadcast %c15_i32 : i32 to vector<1x256xi32>
    %29 = arith.cmpi ne, %25, %28 : vector<1x256xi32>
    %cst_12 = arith.constant 0.000000e+00 : f32
    %30 = vector.broadcast %cst_12 : f32 to vector<4x256xf32>
    %c0_13 = arith.constant 0 : index
    %c111 = arith.constant 111 : index
    %31 = vector.load %arg5[%c0_13, %c111] : memref<4x512xf32, #tpu.memory_space<vmem>>, vector<4x256xf32>
    %cst_14 = arith.constant 0.000000e+00 : f32
    %32 = vector.shape_cast %27 : vector<1x256xi1> to vector<1x256xi1>
    %33 = vector.broadcast %32 : vector<1x256xi1> to vector<4x256xi1>
    %34 = vector.broadcast %cst_14 : f32 to vector<4x256xf32>
    %35 = arith.select %33, %31, %34 : vector<4x256xi1>, vector<4x256xf32>
    %c0_15 = arith.constant 0 : index
    %c0_16 = arith.constant 0 : index
    %c0_17 = arith.constant 0 : index
    %36 = vector.load %arg2[%c0_15, %c0_16, %c0_17] : memref<9x4x4xf32, #tpu.memory_space<vmem>>, vector<1x4x4xf32>
    %37 = vector.shape_cast %36 : vector<1x4x4xf32> to vector<4x4xf32>
    %cst_18 = arith.constant dense<0.000000e+00> : vector<4x256xf32>
    %38 = tpu.matmul %37, %35, %cst_18 {dimension_numbers = #tpu.dot_dimension_numbers<[1], [0], [0], [1], [0, 0, 1, 1], [], []>} : vector<4x4xf32>, vector<4x256xf32>, vector<4x256xf32> -> vector<4x256xf32>
    %39 = arith.addf %30, %38 : vector<4x256xf32>
    %c0_19 = arith.constant 0 : index
    %c112 = arith.constant 112 : index
    %40 = vector.load %arg5[%c0_19, %c112] : memref<4x512xf32, #tpu.memory_space<vmem>>, vector<4x256xf32>
    %c1 = arith.constant 1 : index
    %c0_20 = arith.constant 0 : index
    %c0_21 = arith.constant 0 : index
    %41 = vector.load %arg2[%c1, %c0_20, %c0_21] : memref<9x4x4xf32, #tpu.memory_space<vmem>>, vector<1x4x4xf32>
    %42 = vector.shape_cast %41 : vector<1x4x4xf32> to vector<4x4xf32>
    %cst_22 = arith.constant dense<0.000000e+00> : vector<4x256xf32>
    %43 = tpu.matmul %42, %40, %cst_22 {dimension_numbers = #tpu.dot_dimension_numbers<[1], [0], [0], [1], [0, 0, 1, 1], [], []>} : vector<4x4xf32>, vector<4x256xf32>, vector<4x256xf32> -> vector<4x256xf32>
    %44 = arith.addf %39, %43 : vector<4x256xf32>
    %c0_23 = arith.constant 0 : index
    %c113 = arith.constant 113 : index
    %45 = vector.load %arg5[%c0_23, %c113] : memref<4x512xf32, #tpu.memory_space<vmem>>, vector<4x256xf32>
    %cst_24 = arith.constant 0.000000e+00 : f32
    %46 = vector.shape_cast %29 : vector<1x256xi1> to vector<1x256xi1>
    %47 = vector.broadcast %46 : vector<1x256xi1> to vector<4x256xi1>
    %48 = vector.broadcast %cst_24 : f32 to vector<4x256xf32>
    %49 = arith.select %47, %45, %48 : vector<4x256xi1>, vector<4x256xf32>
    %c2 = arith.constant 2 : index
    %c0_25 = arith.constant 0 : index
    %c0_26 = arith.constant 0 : index
    %50 = vector.load %arg2[%c2, %c0_25, %c0_26] : memref<9x4x4xf32, #tpu.memory_space<vmem>>, vector<1x4x4xf32>
    %51 = vector.shape_cast %50 : vector<1x4x4xf32> to vector<4x4xf32>
    %cst_27 = arith.constant dense<0.000000e+00> : vector<4x256xf32>
    %52 = tpu.matmul %51, %49, %cst_27 {dimension_numbers = #tpu.dot_dimension_numbers<[1], [0], [0], [1], [0, 0, 1, 1], [], []>} : vector<4x4xf32>, vector<4x256xf32>, vector<4x256xf32> -> vector<4x256xf32>
    %53 = arith.addf %44, %52 : vector<4x256xf32>
    %c0_28 = arith.constant 0 : index
    %c127 = arith.constant 127 : index
    %54 = vector.load %arg5[%c0_28, %c127] : memref<4x512xf32, #tpu.memory_space<vmem>>, vector<4x256xf32>
    %cst_29 = arith.constant 0.000000e+00 : f32
    %55 = vector.shape_cast %27 : vector<1x256xi1> to vector<1x256xi1>
    %56 = vector.broadcast %55 : vector<1x256xi1> to vector<4x256xi1>
    %57 = vector.broadcast %cst_29 : f32 to vector<4x256xf32>
    %58 = arith.select %56, %54, %57 : vector<4x256xi1>, vector<4x256xf32>
    %c3 = arith.constant 3 : index
    %c0_30 = arith.constant 0 : index
    %c0_31 = arith.constant 0 : index
    %59 = vector.load %arg2[%c3, %c0_30, %c0_31] : memref<9x4x4xf32, #tpu.memory_space<vmem>>, vector<1x4x4xf32>
    %60 = vector.shape_cast %59 : vector<1x4x4xf32> to vector<4x4xf32>
    %cst_32 = arith.constant dense<0.000000e+00> : vector<4x256xf32>
    %61 = tpu.matmul %60, %58, %cst_32 {dimension_numbers = #tpu.dot_dimension_numbers<[1], [0], [0], [1], [0, 0, 1, 1], [], []>} : vector<4x4xf32>, vector<4x256xf32>, vector<4x256xf32> -> vector<4x256xf32>
    %62 = arith.addf %53, %61 : vector<4x256xf32>
    %c0_33 = arith.constant 0 : index
    %c128_34 = arith.constant 128 : index
    %63 = vector.load %arg5[%c0_33, %c128_34] : memref<4x512xf32, #tpu.memory_space<vmem>>, vector<4x256xf32>
    %c4 = arith.constant 4 : index
    %c0_35 = arith.constant 0 : index
    %c0_36 = arith.constant 0 : index
    %64 = vector.load %arg2[%c4, %c0_35, %c0_36] : memref<9x4x4xf32, #tpu.memory_space<vmem>>, vector<1x4x4xf32>
    %65 = vector.shape_cast %64 : vector<1x4x4xf32> to vector<4x4xf32>
    %cst_37 = arith.constant dense<0.000000e+00> : vector<4x256xf32>
    %66 = tpu.matmul %65, %63, %cst_37 {dimension_numbers = #tpu.dot_dimension_numbers<[1], [0], [0], [1], [0, 0, 1, 1], [], []>} : vector<4x4xf32>, vector<4x256xf32>, vector<4x256xf32> -> vector<4x256xf32>
    %67 = arith.addf %62, %66 : vector<4x256xf32>
    %c0_38 = arith.constant 0 : index
    %c129 = arith.constant 129 : index
    %68 = vector.load %arg5[%c0_38, %c129] : memref<4x512xf32, #tpu.memory_space<vmem>>, vector<4x256xf32>
    %cst_39 = arith.constant 0.000000e+00 : f32
    %69 = vector.shape_cast %29 : vector<1x256xi1> to vector<1x256xi1>
    %70 = vector.broadcast %69 : vector<1x256xi1> to vector<4x256xi1>
    %71 = vector.broadcast %cst_39 : f32 to vector<4x256xf32>
    %72 = arith.select %70, %68, %71 : vector<4x256xi1>, vector<4x256xf32>
    %c5 = arith.constant 5 : index
    %c0_40 = arith.constant 0 : index
    %c0_41 = arith.constant 0 : index
    %73 = vector.load %arg2[%c5, %c0_40, %c0_41] : memref<9x4x4xf32, #tpu.memory_space<vmem>>, vector<1x4x4xf32>
    %74 = vector.shape_cast %73 : vector<1x4x4xf32> to vector<4x4xf32>
    %cst_42 = arith.constant dense<0.000000e+00> : vector<4x256xf32>
    %75 = tpu.matmul %74, %72, %cst_42 {dimension_numbers = #tpu.dot_dimension_numbers<[1], [0], [0], [1], [0, 0, 1, 1], [], []>} : vector<4x4xf32>, vector<4x256xf32>, vector<4x256xf32> -> vector<4x256xf32>
    %76 = arith.addf %67, %75 : vector<4x256xf32>
    %c0_43 = arith.constant 0 : index
    %c143 = arith.constant 143 : index
    %77 = vector.load %arg5[%c0_43, %c143] : memref<4x512xf32, #tpu.memory_space<vmem>>, vector<4x256xf32>
    %cst_44 = arith.constant 0.000000e+00 : f32
    %78 = vector.shape_cast %27 : vector<1x256xi1> to vector<1x256xi1>
    %79 = vector.broadcast %78 : vector<1x256xi1> to vector<4x256xi1>
    %80 = vector.broadcast %cst_44 : f32 to vector<4x256xf32>
    %81 = arith.select %79, %77, %80 : vector<4x256xi1>, vector<4x256xf32>
    %c6 = arith.constant 6 : index
    %c0_45 = arith.constant 0 : index
    %c0_46 = arith.constant 0 : index
    %82 = vector.load %arg2[%c6, %c0_45, %c0_46] : memref<9x4x4xf32, #tpu.memory_space<vmem>>, vector<1x4x4xf32>
    %83 = vector.shape_cast %82 : vector<1x4x4xf32> to vector<4x4xf32>
    %cst_47 = arith.constant dense<0.000000e+00> : vector<4x256xf32>
    %84 = tpu.matmul %83, %81, %cst_47 {dimension_numbers = #tpu.dot_dimension_numbers<[1], [0], [0], [1], [0, 0, 1, 1], [], []>} : vector<4x4xf32>, vector<4x256xf32>, vector<4x256xf32> -> vector<4x256xf32>
    %85 = arith.addf %76, %84 : vector<4x256xf32>
    %c0_48 = arith.constant 0 : index
    %c144 = arith.constant 144 : index
    %86 = vector.load %arg5[%c0_48, %c144] : memref<4x512xf32, #tpu.memory_space<vmem>>, vector<4x256xf32>
    %c7 = arith.constant 7 : index
    %c0_49 = arith.constant 0 : index
    %c0_50 = arith.constant 0 : index
    %87 = vector.load %arg2[%c7, %c0_49, %c0_50] : memref<9x4x4xf32, #tpu.memory_space<vmem>>, vector<1x4x4xf32>
    %88 = vector.shape_cast %87 : vector<1x4x4xf32> to vector<4x4xf32>
    %cst_51 = arith.constant dense<0.000000e+00> : vector<4x256xf32>
    %89 = tpu.matmul %88, %86, %cst_51 {dimension_numbers = #tpu.dot_dimension_numbers<[1], [0], [0], [1], [0, 0, 1, 1], [], []>} : vector<4x4xf32>, vector<4x256xf32>, vector<4x256xf32> -> vector<4x256xf32>
    %90 = arith.addf %85, %89 : vector<4x256xf32>
    %c0_52 = arith.constant 0 : index
    %c145 = arith.constant 145 : index
    %91 = vector.load %arg5[%c0_52, %c145] : memref<4x512xf32, #tpu.memory_space<vmem>>, vector<4x256xf32>
    %cst_53 = arith.constant 0.000000e+00 : f32
    %92 = vector.shape_cast %29 : vector<1x256xi1> to vector<1x256xi1>
    %93 = vector.broadcast %92 : vector<1x256xi1> to vector<4x256xi1>
    %94 = vector.broadcast %cst_53 : f32 to vector<4x256xf32>
    %95 = arith.select %93, %91, %94 : vector<4x256xi1>, vector<4x256xf32>
    %c8 = arith.constant 8 : index
    %c0_54 = arith.constant 0 : index
    %c0_55 = arith.constant 0 : index
    %96 = vector.load %arg2[%c8, %c0_54, %c0_55] : memref<9x4x4xf32, #tpu.memory_space<vmem>>, vector<1x4x4xf32>
    %97 = vector.shape_cast %96 : vector<1x4x4xf32> to vector<4x4xf32>
    %cst_56 = arith.constant dense<0.000000e+00> : vector<4x256xf32>
    %98 = tpu.matmul %97, %95, %cst_56 {dimension_numbers = #tpu.dot_dimension_numbers<[1], [0], [0], [1], [0, 0, 1, 1], [], []>} : vector<4x4xf32>, vector<4x256xf32>, vector<4x256xf32> -> vector<4x256xf32>
    %99 = arith.addf %90, %98 : vector<4x256xf32>
    %c0_57 = arith.constant 0 : index
    %c0_58 = arith.constant 0 : index
    %100 = vector.load %arg3[%c0_57, %c0_58] : memref<4x1xf32, #tpu.memory_space<vmem>>, vector<4x1xf32>
    %101 = vector.broadcast %100 : vector<4x1xf32> to vector<4x256xf32>
    %102 = arith.addf %99, %101 : vector<4x256xf32>
    %c0_59 = arith.constant 0 : index
    %c0_60 = arith.constant 0 : index
    %c0_61 = arith.constant 0 : index
    %103 = vector.load %arg4[%c0_59, %c0_60, %c0_61] : memref<1x4x256xf32, #tpu.memory_space<vmem>>, vector<1x4x256xf32>
    %104 = vector.shape_cast %103 : vector<1x4x256xf32> to vector<4x256xf32>
    %105 = vector.shape_cast %102 : vector<4x256xf32> to vector<1x4x256xf32>
    tpu.vector_store %arg4[%c0_59, %c0_60, %c0_61], %105 {strides = array<i32>} : memref<1x4x256xf32, #tpu.memory_space<vmem>>, vector<1x4x256xf32>,
    return
  }
  func.func @transform_0(%arg0: i32) -> (i32, i32, i32) {
    %c0_i32 = arith.constant 0 : i32
    %c0_i32_0 = arith.constant 0 : i32
    %c0_i32_1 = arith.constant 0 : i32
    return %arg0, %c0_i32, %c0_i32_0 : i32, i32, i32
  }
  func.func @transform_1(%arg0: i32) -> (i32, i32, i32) {
    %c0_i32 = arith.constant 0 : i32
    %c0_i32_0 = arith.constant 0 : i32
    %c0_i32_1 = arith.constant 0 : i32
    %c0_i32_2 = arith.constant 0 : i32
    return %c0_i32, %c0_i32_0, %c0_i32_1 : i32, i32, i32
  }
  func.func @transform_2(%arg0: i32) -> (i32, i32) {
    %c0_i32 = arith.constant 0 : i32
    %c0_i32_0 = arith.constant 0 : i32
    %c0_i32_1 = arith.constant 0 : i32
    return %c0_i32, %c0_i32_0 : i32, i32
  }
  func.func @transform_3(%arg0: i32) -> (i32, i32, i32) {
    %c0_i32 = arith.constant 0 : i32
    %c0_i32_0 = arith.constant 0 : i32
    %c0_i32_1 = arith.constant 0 : i32
    return %arg0, %c0_i32, %c0_i32_0 : i32, i32, i32
  }
}

</mosaic_0001>

<bundles_post_ra>
// kernel: tpu_custom_call.1
= control target key start
LH: loop header
LB: loop body
LE: loop exit
PB: predicated region body
PF: predicated region fallthrough
CT: control target
= control target key end

     0   :  { %8 = vsyncpa [#allocation4], 0  ;;  %s1369_s0 = inlined_call_operand.vmem [shape: f32[2,4,256], index: 0, kind: input, shape index: {}]   ;;  %s1370_s1 = inlined_call_operand.vmem [shape: f32[9,4,4], index: 1, kind: input, shape index: {}]   ;;  %s1371_s2 = inlined_call_operand.vmem [shape: f32[4,1], index: 2, kind: input, shape index: {}]   ;;  %s1372_s3 = inlined_call_operand.hbm [shape: f32[2,4,256], index: 3, kind: output, shape index: {}]  }
   0x1   :  { %10 = vsyncpa [#allocation4 + $0x1], 0  ;;  %s1153_s12 = smov 0   ;;  %s1155_s13 = smov 0  }
   0x2   :  { %s1157_s14 = smov 0   ;;  %s1159_s15 = smov 0  }
   0x3 LB: > { %s1174_s16 = sadd.s32 4294967295, %s1121_s15   ;;  %s951_s17 = sadd.s32 4294967294, %s1121_s15   ;;  %s1121_s15 = sphi %s1159_s15, %s1386_s15   ;;  %s1117_s14 = sphi %s1157_s14, %s1385_s14   ;;  %s1113_s13 = sphi %s1155_s13, %s1384_s13   ;;  %s1109_s12 = sphi %s1153_s12, %s1383_s12  }
   0x4   : > { %s1178_s18 = sadd.s32 1, %s1121_s15   ;;  %s91_s19 = sadd.s32 1, %s1117_s14 }
   0x5   : > { %s88_s20 = ssub.s32 %s1121_s15, %s1178_s18  ;;  %p101_p0 = scmp.ne.s32.totalorder %s1117_s14, %s1113_s13 }
   0x6   : > { %p89_p1 = scmp.eq.s32.totalorder %s88_s20, 0  ;;  %p102_p2 = scmp.eq.s32.totalorder %s1174_s16, 1 }
   0x7   : > { %p107_p3 = scmp.ne.s32.totalorder %s1113_s13, %s1109_s12  ;;  %p108_p4 = scmp.eq.s32.totalorder %s951_s17, 1 }
   0x8   : > { %s1189_s21 = scalar_select %p89_p1, %s1117_s14, %s91_s19  }
   0x9   : > { %p1191_p5 = por %p102_p2, %p101_p0  ;;  %p1195_p6 = por %p108_p4, %p107_p3 }
   0xa   : > { %p954_p7 = scmp.ge.s32.totalorder %s1121_s15, 1  ;;  %p140_p8 = scmp.lt.s32.totalorder %s1121_s15, 3 }
   0xc   : > { %p141_p9 = pnand %p954_p7, %p140_p8 }
   0xd   : > { %p164_p10 = scmp.lt.s32.totalorder (!%p141_p9), %s1174_s16, 1  ;;  %s1124_s29 = smov (!%p141_p9), 17  }
   0xe   : > { %144 = sbr.rel (%p141_p9) target bundleno = 358 (0x166), region = 32  ;;  %s1125_s30 = smov (!%p141_p9), 16  }
   0xf   : > { %s1126_s4 = smov (!%p141_p9), 15   ;;  %s1127_s5 = smov (!%p141_p9), 1  }
  0x10   : > { %s1128_s6 = smov (!%p141_p9), 127   ;;  %s1129_s7 = smov (!%p141_p9), 113  }
  0x11   : > { %s1130_s8 = smov (!%p141_p9), 112   ;;  %s1131_s9 = smov (!%p141_p9), 111  }
  0x12   : > { %s161_s17 = sand.u32 (!%p141_p9), 1, %s1113_s13   ;;  %s1008_s20 = sshll.u32 (!%p141_p9), %s1174_s16, 3 }
  0x13   : > { %v1123_v0 = vmov 0.0   ;;  %s165_s24 = scalar_select %p164_p10, %s1174_s16, 1  ;;  %v173_v38 = vlaneseq  ;;  %vm224_vm0 = vcmask 138240   ;;  %vm257_vm2 = vcmask 1043456   ;;  %v231_v49 = vld [vmem:[%s1370_s1] sm:$0xf] }
  0x14   : > { %169 = vst [vmem:[#allocation2] sm:$0xf] %v1123_v0  ;;  %vm253_vm3 = vcmask 31744   ;;  %vm250_vm4 = vcmask 130048   ;;  %vm447_vm6 = vcmask 7168   ;;  %vm371_vm7 = vcmask 121856   ;;  %s887_s26 = scalar_lea.hbm %s1372_s3, %s1008_s20 }
  0x15   : > { %172 = vst [vmem:[#allocation2 + $0xc] sm:$0xf] %v1123_v0  ;;  %s1007_s25 = sshll.u32 %s165_s24, 3  ;;  %v174_v40 = vand.u32 127, %v173_v38  ;;  %v958_v58 = vld [vmem:[%s1370_s1 + $0x4] sm:$0xf] }
  0x16   : > { %s168_s28 = scalar_lea.vmem %s1369_s0, %s1007_s25  ;;  %v972_v60 = vld [vmem:[%s1370_s1 + $0xc] sm:$0xf]  ;;  %vm579_vm10 = vcmask 1039360   ;;  %vm733_vm11 = vcmask 916480   ;;  %vm655_vm12 = vcmask 924672   ;;  %vm801_vm13 = vcmask 908288  }
  0x17   : > { %v1206_v1 = vld [vmem:[%s168_s28] sm:$0xff]  ;;  %v180_v41 = vand.u32 15, %v174_v40  ;;  %v175_v43 = vadd.s32 128, %v174_v40  ;;  %s955_s19 = sshll.u32 %s161_s17, 3  ;;  %s876_s16 = scalar_lea.sflag [#allocation4], %s161_s17 }
  0x18   : > { %171 = vst [vmem:[#allocation2 + $0x4] sm:$0xff] %v1206_v1  ;;  %s163_s27 = scalar_lea.vmem [#allocation3], %s955_s19 }
  0x19   : > { %vm1218_vm1 = vcmp.ne.s32.totalorder %v180_v41, 0  ;;  %v187_v48 = vand.u32 15, %v175_v43  ;;  %vm1275_vm9 = vcmp.ne.s32.totalorder %v180_v41, 15  ;;  %v997_v43 = vld [vmem:[%s1370_s1 + $0x20] sm:$0xf]  ;;  %s889_s28 = sshll.u32 %s163_s27, 4  ;;  %s890_s28 = int_to_ptr.vmem [resolvable:$true] %s889_s28 }
  0x1b   : > { %vm1230_vm5 = vcmp.ne.s32.totalorder %v187_v48, 0  ;;  %vm1256_vm8 = vcmp.ne.s32.totalorder %v187_v48, 15 }
  0x1c   : > { %v564_v16 = vld [vmem:[#allocation2 + $0xc] sm:$0xf] }
  0x1d   : > { %v640_v20 = vld [vmem:[#allocation2 + $0xc] sm:$0xf] }
  0x1e   : > { %v716_v24 = vld [vmem:[#allocation2 + $0xc] sm:$0xf] }
  0x1f   : > { %v204_v2 = vld [vmem:[#allocation2] sm:$0xff]  ;;  %v205_v3 = vld [vmem:[#allocation2 + $0x8] sm:$0xf]  ;;  %v786_v28 = vld [vmem:[#allocation2 + $0xc] sm:$0xf] }
  0x20   : > { %212 = vst [vmem:[#allocation1] ss:$2 sm:$0xff] %v204_v2  ;;  %v233_v4 = vld [vmem:[#allocation2 + $0x8] sm:$0xf] }
  0x21   : > { %214 = vst [vmem:[#allocation1 + $0x10] ss:$2 sm:$0xff] %v205_v3  ;;  %v352_v8 = vld [vmem:[#allocation2 + $0x8] sm:$0xf] }
  0x22   : > { %v432_v12 = vld [vmem:[#allocation2 + $0x8] sm:$0xf] }
  0x27   : > { %v216_v5 = vld.sshfl [vmem:[#allocation1 + $0x8] sm:$0xff pattern:$0x75316420]  ;;  %v215_v6 = vld.sshfl [vmem:[#allocation1] sm:$0xff pattern:$0x75316420] }
  0x28   : > { %220 = vrot.lane.b32.xlu0 %v216_v5, %s1124_s29  ;;  %238 = vst [vmem:[#allocation1] ss:$2 sm:$0xff] %v204_v2  ;;  %v217_v7 = vld.sshfl [vmem:[#allocation1 + $0x10] sm:$0xff pattern:$0x75316420]  ;;  %218 = vrot.lane.b32.xlu2 %v215_v6, %s1124_s29 }
  0x29   : > { %240 = vst [vmem:[#allocation1 + $0x10] ss:$2 sm:$0xff] %v233_v4  ;;  %v967_v5 = vld [vmem:[%s1370_s1 + $0x8] sm:$0xf] }
  0x2f   : > { %v242_v9 = vld.sshfl [vmem:[#allocation1 + $0x8] sm:$0xff pattern:$0x75316420]  ;;  %v241_v10 = vld.sshfl [vmem:[#allocation1] sm:$0xff pattern:$0x75316420] }
  0x30   : > { %222 = vrot.lane.b32.xlu0 %v217_v7, %s1124_s29  ;;  %246 = vrot.lane.b32.xlu1 %v242_v9, %s1125_s30  ;;  %359 = vst [vmem:[#allocation1] ss:$2 sm:$0xff] %v204_v2  ;;  %v243_v11 = vld.sshfl [vmem:[#allocation1 + $0x10] sm:$0xff pattern:$0x75316420]  ;;  %s891_s29 = sshll.u32 %s887_s26, 4  ;;  %s892_s29 = int_to_ptr.hbm [resolvable:$true] %s891_s29 }
  0x31   : > { %361 = vst [vmem:[#allocation1 + $0x10] ss:$2 sm:$0xff] %v352_v8  ;;  %244 = vrot.lane.b32.xlu2 %v241_v10, %s1125_s30 }
  0x37   : > { %v363_v13 = vld.sshfl [vmem:[#allocation1 + $0x8] sm:$0xff pattern:$0x75316420]  ;;  %v362_v14 = vld.sshfl [vmem:[#allocation1] sm:$0xff pattern:$0x75316420] }
  0x38   : > { %248 = vrot.lane.b32.xlu1 %v243_v11, %s1125_s30  ;;  %367 = vrot.lane.b32.xlu0 %v363_v13, %s1126_s4  ;;  %v364_v15 = vld.sshfl [vmem:[#allocation1 + $0x10] sm:$0xff pattern:$0x75316420]  ;;  %435 = vst [vmem:[#allocation1] ss:$2 sm:$0xff] %v204_v2  ;;  %s1073_s30 = sshra.s32 %s892_s29, 4  ;;  %s1074_s30 = int_to_ptr.hbm [resolvable:$true] %s1073_s30 }
  0x39   : > { %437 = vst [vmem:[#allocation1 + $0x10] ss:$2 sm:$0xff] %v432_v12  ;;  %v977_v13 = vld [vmem:[%s1370_s1 + $0x10] sm:$0xf]  ;;  %p1080_p0 = scmp.lt.s32.totalorder %s1074_s30, %s1372_s3 }
  0x3f   : > { %v438_v17 = vld.sshfl [vmem:[#allocation1] sm:$0xff pattern:$0x75316420]  ;;  %v439_v18 = vld.sshfl [vmem:[#allocation1 + $0x8] sm:$0xff pattern:$0x75316420] }
  0x40   : > { %369 = vrot.lane.b32.xlu1 %v364_v15, %s1126_s4  ;;  %v440_v19 = vld.sshfl [vmem:[#allocation1 + $0x10] sm:$0xff pattern:$0x75316420]  ;;  %511 = vst [vmem:[#allocation1] ss:$2 sm:$0xff] %v1206_v1  ;;  %443 = vrot.lane.b32.xlu2 %v439_v18, %s1127_s5 }
  0x41   : > { %569 = vst [vmem:[#allocation1 + $0x10] ss:$2 sm:$0xff] %v564_v16  ;;  %445 = vrot.lane.b32.xlu0 %v440_v19, %s1127_s5  ;;  %v861_v15 = vld [vmem:[%s1371_s2] sm:$0xf]  ;;  %v1132_v16 = vmov 0  }
  0x42   : > { %1058 = vset.pattern.permute.xlu0 %v1132_v16 }
  0x47   : > { %v1210_v21 = vld.sshfl [vmem:[#allocation1] sm:$0xff pattern:$0x75316420]  ;;  %v1212_v22 = vld.sshfl [vmem:[#allocation1 + $0x8] sm:$0xff pattern:$0x75316420] }
  0x48   : > { %365 = vrot.lane.b32.xlu1 %v362_v14, %s1126_s4  ;;  %v572_v23 = vld.sshfl [vmem:[#allocation1 + $0x10] sm:$0xff pattern:$0x75316420]  ;;  %567 = vst [vmem:[#allocation1] ss:$2 sm:$0xff] %v1206_v1  ;;  %441 = vrot.lane.b32.xlu2 %v438_v17, %s1127_s5  ;;  %s1075_s4 = scalar_lea.hbm %s1074_s30, 8 }
  0x49   : > { %645 = vst [vmem:[#allocation1 + $0x10] ss:$2 sm:$0xff] %v640_v20  ;;  %p1076_p11 = scmp.ne.s32.totalorder %s1074_s30, %s1075_s4 }
  0x4b   : > { %p1077_p12 = pnand %p1076_p11, %p1191_p5 }
  0x4d   : > { %p1078_p13 = pneg %p1077_p12 }
  0x4f   : > { %v571_v25 = vld.sshfl [vmem:[#allocation1 + $0x8] sm:$0xff pattern:$0x75316420]  ;;  %v570_v26 = vld.sshfl [vmem:[#allocation1] sm:$0xff pattern:$0x75316420] }
  0x50   : > { %577 = vrot.lane.b32.xlu1 %v572_v23, %s1128_s6  ;;  %575 = vrot.lane.b32.xlu0 %v571_v25, %s1128_s6  ;;  %v648_v27 = vld.sshfl [vmem:[#allocation1 + $0x10] sm:$0xff pattern:$0x75316420]  ;;  %643 = vst [vmem:[#allocation1] ss:$2 sm:$0xff] %v1206_v1 }
  0x51   : > { %723 = vst [vmem:[#allocation1 + $0x10] ss:$2 sm:$0xff] %v716_v24  ;;  %573 = vrot.lane.b32.xlu2 %v570_v26, %s1128_s6 }
  0x57   : > { %v647_v29 = vld.sshfl [vmem:[#allocation1 + $0x8] sm:$0xff pattern:$0x75316420]  ;;  %v646_v30 = vld.sshfl [vmem:[#allocation1] sm:$0xff pattern:$0x75316420] }
  0x58   : > { %653 = vrot.lane.b32.xlu1 %v648_v27, %s1129_s7  ;;  %651 = vrot.lane.b32.xlu0 %v647_v29, %s1129_s7  ;;  %v726_v31 = vld.sshfl [vmem:[#allocation1 + $0x10] sm:$0xff pattern:$0x75316420]  ;;  %721 = vst [vmem:[#allocation1] ss:$2 sm:$0xff] %v1206_v1 }
  0x59   : > { %791 = vst [vmem:[#allocation1 + $0x10] ss:$2 sm:$0xff] %v786_v28  ;;  %v987_v29 = vld [vmem:[%s1370_s1 + $0x18] sm:$0xf] }
  0x5f   : > { %v724_v32 = vld.sshfl [vmem:[#allocation1] sm:$0xff pattern:$0x75316420]  ;;  %v725_v33 = vld.sshfl [vmem:[#allocation1 + $0x8] sm:$0xff pattern:$0x75316420] }
  0x60   : > { %731 = vrot.lane.b32.xlu0 %v726_v31, %s1130_s8  ;;  %649 = vrot.lane.b32.xlu1 %v646_v30, %s1129_s7  ;;  %789 = vst [vmem:[#allocation1] ss:$2 sm:$0xff] %v1206_v1  ;;  %v794_v34 = vld.sshfl [vmem:[#allocation1 + $0x10] sm:$0xff pattern:$0x75316420]  ;;  %s1079_s7 = scalar_lea.hbm %s1372_s3, 16 }
  0x61   : > { %729 = vrot.lane.b32.xlu2 %v725_v33, %s1130_s8  ;;  %v992_v30 = vld [vmem:[%s1370_s1 + $0x1c] sm:$0xf]  ;;  %p1081_p1 = scmp.lt.s32.totalorder %s1079_s7, %s1075_s4 }
  0x63   : > { %p1082_p2 = por %p1081_p1, %p1080_p0 }
  0x65   : > { %p1083_p3 = pnand %p1082_p2, %p1078_p13 }
  0x67   : > { %v793_v35 = vld.sshfl [vmem:[#allocation1 + $0x8] sm:$0xff pattern:$0x75316420]  ;;  %v792_v36 = vld.sshfl [vmem:[#allocation1] sm:$0xff pattern:$0x75316420] }
  0x68   : > { %799 = vrot.lane.b32.xlu1 %v794_v34, %s1131_s9  ;;  %797 = vrot.lane.b32.xlu0 %v793_v35, %s1131_s9 }
  0x69   : > { %727 = vrot.lane.b32.xlu2 %v724_v32, %s1130_s8 }
  0x70   : > { %864 = vperm.xlu0 %1058, %v861_v15  }
  0x71   : > { %795 = vrot.lane.b32.xlu2 %v792_v36, %s1131_s9 }
  0x82   : > { %v219_v37 = vpop.permute.xlu2 %218 }
  0x8b   : > { %v245_v39 = vpop.permute.xlu2 %244 }
  0x9a   : > { %v221_v44 = vpop.permute.xlu0 %220  ;;  %v444_v45 = vpop.permute.xlu2 %443 }
  0x9b   : > { %v225_v46 = vsel %vm224_vm0, %v219_v37, %v221_v44 }
  0x9c   : > { %v229_v47 = vsel %vm1218_vm1, %v225_v46, 0.0 }
  0x9d   : > { %963 = vmatpush.msk.msra.mxu2 %vm257_vm2, %v229_v47 }
  0x9e   : > { %964 = vmatmul.msk.f32.vlgmr.msra.gmra.mxu2 %vm253_vm3, %v231_v49 }
  0xa2   : > { %v223_v51 = vpop.permute.xlu0 %222  ;;  %v247_v52 = vpop.permute.xlu1 %246 }
  0xa3   : > { %v251_v53 = vsel %vm250_vm4, %v245_v39, %v247_v52  ;;  %v226_v54 = vsel %vm224_vm0, %v221_v44, %v223_v51  ;;  %v442_v55 = vpop.permute.xlu2 %441 }
  0xa4   : > { %959 = vmatpush.msk.msra.mxu0 %vm257_vm2, %v251_v53  ;;  %v230_v56 = vsel %vm1230_vm5, %v226_v54, 0.0  ;;  %v448_v57 = vsel %vm447_vm6, %v442_v55, %v444_v45 }
  0xa5   : > { %965 = vmatpush.msk.msra.mxu3 %vm257_vm2, %v230_v56  ;;  %v452_v59 = vsel %vm1218_vm1, %v448_v57, 0.0  ;;  %960 = vmatmul.msk.f32.vlgmr.msra.gmra.mxu0 %vm253_vm3, %v958_v58 }
  0xa6   : > { %966 = vmatmul.msk.f32.vlgmr.msra.gmra.mxu3 %vm253_vm3, %v231_v49  ;;  %973 = vmatpush.msk.msrb.mxu2 %vm257_vm2, %v452_v59 }
  0xa7   : > { %974 = vmatmul.msk.f32.vlgmr.msrb.gmra.mxu2 %vm253_vm3, %v972_v60 }
  0xaa   : > { %v249_v61 = vpop.permute.xlu1 %248  ;;  %v368_v62 = vpop.permute.xlu0 %367 }
  0xab   : > { %v252_v63 = vsel %vm250_vm4, %v247_v52, %v249_v61  ;;  %v574_v1 = vpop.permute.xlu2 %573 }
  0xac   : > { %961 = vmatpush.msk.msra.mxu1 %vm257_vm2, %v252_v63 }
  0xad   : > { %962 = vmatmul.msk.f32.vlgmr.msra.gmra.mxu1 %vm253_vm3, %v958_v58 }
  0xb2   : > { %v370_v2 = vpop.permute.xlu1 %369 }
  0xb3   : > { %v373_v3 = vsel %vm371_vm7, %v368_v62, %v370_v2  ;;  %v446_v4 = vpop.permute.xlu0 %445 }
  0xb4   : > { %v449_v6 = vsel %vm447_vm6, %v444_v45, %v446_v4  ;;  %v377_v7 = vsel %vm1256_vm8, %v373_v3, 0.0 }
  0xb5   : > { %970 = vmatpush.msk.msrb.mxu1 %vm257_vm2, %v377_v7  ;;  %v453_v8 = vsel %vm1230_vm5, %v449_v6, 0.0 }
  0xb6   : > { %975 = vmatpush.msk.msrb.mxu3 %vm257_vm2, %v453_v8  ;;  %971 = vmatmul.msk.f32.vlgmr.msrb.gmra.mxu1 %vm253_vm3, %v967_v5 }
  0xb7   : > { %976 = vmatmul.msk.f32.vlgmr.msrb.gmra.mxu3 %vm253_vm3, %v972_v60  ;;  %980 = vmatpush.msk.msra.mxu1 %vm257_vm2, %v1212_v22  ;;  %v982_v22 = vld [vmem:[%s1370_s1 + $0x14] sm:$0xf] }
  0xba   : > { %v366_v10 = vpop.permute.xlu1 %365 }
  0xbb   : > { %v372_v11 = vsel %vm371_vm7, %v366_v10, %v368_v62  ;;  %v730_v12 = vpop.permute.xlu2 %729 }
  0xbc   : > { %v376_v14 = vsel %vm1275_vm9, %v372_v11, 0.0 }
  0xbd   : > { %968 = vmatpush.msk.msrb.mxu0 %vm257_vm2, %v376_v14 }
  0xbe   : > { %969 = vmatmul.msk.f32.vlgmr.msrb.gmra.mxu0 %vm253_vm3, %v967_v5  ;;  %981 = vmatmul.msk.f32.vlgmr.msra.gmra.mxu1 %vm253_vm3, %v977_v13 }
  0xbf   : > { %978 = vmatpush.msk.msra.mxu0 %vm257_vm2, %v1210_v21 }
  0xc2   : > { %v578_v17 = vpop.permute.xlu1 %577  ;;  %v576_v18 = vpop.permute.xlu0 %575 }
  0xc3   : > { %v580_v19 = vsel %vm579_vm10, %v574_v1, %v576_v18  ;;  %v581_v20 = vsel %vm579_vm10, %v576_v18, %v578_v17  ;;  %v728_v23 = vpop.permute.xlu2 %727 }
  0xc4   : > { %v584_v24 = vsel %vm1275_vm9, %v580_v19, 0.0  ;;  %v585_v21 = vsel %vm1256_vm8, %v581_v20, 0.0  ;;  %v734_v25 = vsel %vm733_vm11, %v728_v23, %v730_v12 }
  0xc5   : > { %983 = vmatpush.msk.msra.mxu2 %vm257_vm2, %v584_v24  ;;  %985 = vmatpush.msk.msra.mxu3 %vm257_vm2, %v585_v21 }
  0xc6   : > { %986 = vmatmul.msk.f32.vlgmr.msra.gmra.mxu3 %vm253_vm3, %v982_v22  ;;  %984 = vmatmul.msk.f32.vlgmr.msra.gmra.mxu2 %vm253_vm3, %v982_v22 }
  0xc7   : > { %979 = vmatmul.msk.f32.vlgmr.msra.gmra.mxu0 %vm253_vm3, %v977_v13  ;;  %993 = vmatpush.msk.msrb.mxu2 %vm257_vm2, %v734_v25 }
  0xca   : > { %v654_v26 = vpop.permute.xlu1 %653  ;;  %v652_v27 = vpop.permute.xlu0 %651 }
  0xcb   : > { %v657_v28 = vsel %vm655_vm12, %v652_v27, %v654_v26  ;;  %v796_v37 = vpop.permute.xlu2 %795 }
  0xcc   : > { %v661_v31 = vsel %vm1230_vm5, %v657_v28, 0.0 }
  0xcd   : > { %990 = vmatpush.msk.msrb.mxu1 %vm257_vm2, %v661_v31 }
  0xce   : > { %991 = vmatmul.msk.f32.vlgmr.msrb.gmra.mxu1 %vm253_vm3, %v987_v29  ;;  %994 = vmatmul.msk.f32.vlgmr.msrb.gmra.mxu2 %vm253_vm3, %v992_v30 }
  0xd2   : > { %v732_v32 = vpop.permute.xlu0 %731  ;;  %v650_v33 = vpop.permute.xlu1 %649 }
  0xd3   : > { %v735_v34 = vsel %vm733_vm11, %v730_v12, %v732_v32  ;;  %v656_v35 = vsel %vm655_vm12, %v650_v33, %v652_v27 }
  0xd4   : > { %v660_v36 = vsel %vm1218_vm1, %v656_v35, 0.0  ;;  %995 = vmatpush.msk.msrb.mxu3 %vm257_vm2, %v735_v34 }
  0xd5   : > { %988 = vmatpush.msk.msrb.mxu0 %vm257_vm2, %v660_v36  ;;  %996 = vmatmul.msk.f32.vlgmr.msrb.gmra.mxu3 %vm253_vm3, %v992_v30 }
  0xd6   : > { %989 = vmatmul.msk.f32.vlgmr.msrb.gmra.mxu0 %vm253_vm3, %v987_v29 }
  0xda   : > { %v800_v38 = vpop.permute.xlu1 %799  ;;  %v798_v39 = vpop.permute.xlu0 %797 }
  0xdb   : > { %v803_v40 = vsel %vm801_vm13, %v798_v39, %v800_v38  ;;  %v802_v41 = vsel %vm801_vm13, %v796_v37, %v798_v39 }
  0xdc   : > { %v807_v42 = vsel %vm1256_vm8, %v803_v40, 0.0  ;;  %v806_v44 = vsel %vm1275_vm9, %v802_v41, 0.0 }
  0xdd   : > { %998 = vmatpush.msk.msra.mxu0 %vm257_vm2, %v806_v44  ;;  %1000 = vmatpush.msk.msra.mxu1 %vm257_vm2, %v807_v42 }
  0xde   : > { %999 = vmatmul.msk.f32.vlgmr.msra.gmra.mxu0 %vm253_vm3, %v997_v43  ;;  %1001 = vmatmul.msk.f32.vlgmr.msra.gmra.mxu1 %vm253_vm3, %v997_v43 }
  0xe2   : > { %v865_v11 = vpop.permute.xlu0 %864 }
 0x121   : > { %v328_v47 = vpop.f32.mrf.mxu2 }
 0x122   : > { %v279_v46 = vpop.f32.mrf.mxu0 }
 0x123   : > { %v329_v53 = vadd.f32 %v328_v47, %v279_v46 }
 0x129   : > { %v348_v48 = vpop.f32.mrf.mxu3 }
 0x12a   : > { %v299_v45 = vpop.f32.mrf.mxu1  ;;  %v482_v52 = vpop.f32.mrf.mxu2 }
 0x12b   : > { %v349_v51 = vadd.f32 %v348_v48, %v299_v45 }
 0x133   : > { %v426_v49 = vpop.f32.mrf.mxu1 }
 0x134   : > { %v430_v55 = vadd.f32 %v426_v49, %v349_v51 }
 0x13a   : > { %v502_v54 = vpop.f32.mrf.mxu3 }
 0x13b   : > { %v406_v50 = vpop.f32.mrf.mxu0  ;;  %v558_v57 = vpop.f32.mrf.mxu1  ;;  %v506_v59 = vadd.f32 %v502_v54, %v430_v55 }
 0x13c   : > { %v429_v56 = vadd.f32 %v406_v50, %v329_v53 }
 0x13d   : > { %v562_v63 = vadd.f32 %v558_v57, %v506_v59 }
 0x13e   : > { %v505_v60 = vadd.f32 %v482_v52, %v429_v56 }
 0x144   : > { %v538_v58 = vpop.f32.mrf.mxu0 }
 0x145   : > { %v561_v0 = vadd.f32 %v538_v58, %v505_v60 }
 0x149   : > { %v614_v61 = vpop.f32.mrf.mxu2  ;;  %v634_v62 = vpop.f32.mrf.mxu3 }
 0x14a   : > { %v638_v1 = vadd.f32 %v634_v62, %v562_v63  ;;  %v637_v4 = vadd.f32 %v614_v61, %v561_v0 }
 0x14b   : > { %v710_v2 = vpop.f32.mrf.mxu1 }
 0x14c   : > { %v714_v6 = vadd.f32 %v710_v2, %v638_v1 }
 0x151   : > { %v760_v7 = vpop.f32.mrf.mxu2 }
 0x153   : > { %v690_v3 = vpop.f32.mrf.mxu0 }
 0x154   : > { %v713_v5 = vadd.f32 %v690_v3, %v637_v4 }
 0x156   : > { %v783_v10 = vadd.f32 %v760_v7, %v713_v5 }
 0x158   : > { %v780_v8 = vpop.f32.mrf.mxu3 }
 0x159   : > { %v784_v9 = vadd.f32 %v780_v8, %v714_v6 }
 0x15b   : > { %v836_v12 = vpop.f32.mrf.mxu0  ;;  %v856_v13 = vpop.f32.mrf.mxu1 }
 0x15c   : > { %v859_v14 = vadd.f32 %v836_v12, %v783_v10  ;;  %v860_v15 = vadd.f32 %v856_v13, %v784_v9 }
 0x15e   : > { %v868_v16 = vadd.f32 %v865_v11, %v860_v15  ;;  %v867_v17 = vadd.f32 %v865_v11, %v859_v14 }
 0x160   : > { %v871_v18 = vrot.slane %v868_v16, 4 }
 0x162   : > { %v872_v19 = vsel %vm257_vm2, %v867_v17, %v871_v18 }
 0x163   : > { %874 = vst [vmem:[%s163_s27] sm:$0xff] %v872_v19 }
 0x164   : > { %1086 = shalt.err (!%p1083_p3)
}
 0x165   : > { %1009 = dma.vmem_to_hbm [thread:$0]  (%p1191_p5), %s890_s28, 128, %s892_s29, %s876_s16  }
 0x166 PF: > { %p1015_p4 = scmp.ge.s32.totalorder %s1121_s15, 2  ;;  %s903_s10 = sand.u32 1, %s1109_s12  }
 0x167   : > { %s904_s11 = scalar_lea.sflag [#allocation4], %s903_s10 }
 0x168   : > { %p1012_p7 = pnand %p1015_p4, %p1195_p6 }
 0x16a   : > { %p1013_p8 = pneg %p1012_p7 }
 0x16c   : > { %1104 = dma.done.wait (%p1013_p8), %s904_s11, 128  }
 0x16d   : > { %1106 = vsyncadd (%p1013_p8), %s904_s11, 4294967168  ;;  %p13_p9 = scmp.ge.s32.totalorder %s1178_s18, 4   ;;  %s1383_s12 = smov %s1113_s13 }
 0x16e   : > { %s1384_s13 = smov %s1117_s14  ;;  %s1385_s14 = smov %s1189_s21 }
 0x16f   : > { %s1386_s15 = smov %s1178_s18  ;;  %15 = sbr.rel (!%p13_p9) target bundleno = 3 (0x3), region = 83 }
 0x174   :  { %910 = vsyncpa [#allocation4], 1 }
 0x175   :  { %912 = vsyncpa [#allocation4 + $0x1], 1 }

</bundles_post_ra>
